<compile_context>
chip_gen: v6e
topology: v6e:2x2x1
jax: 0.10.0
libtpu: 0.0.40
codegen_flags: <defaults>
</compile_context>

<pallas_src>
import jax
import jax.numpy as jnp
from jax import lax
from jax.experimental import pallas as pl
from jax.experimental.pallas import tpu as pltpu

NEG_SLOPE = 0.01   # F.leaky_relu default negative_slope
GIN_EPS = 0.0      # GINConv default eps (train_eps=False)


# ----------------------------------------------------------------------------
# Fused Pallas kernel: full GINCustom forward
# ----------------------------------------------------------------------------
def _gin_forward_kernel(x_ref, adj_ref, pool_ref,
                        w1a_ref, b1a_ref, wpack_ref, bpack_ref,
                        l1w_ref, l1b_ref, l2wt_ref, l2b_ref,
                        out_ref):
    adj = adj_ref[...]      # [N, N]  adj_plus[i, j] = #edges j->i (+ (1+eps) on diag)
    pool = pool_ref[...]    # [G, N]  one-hot graph membership (sum pooling)

    def mlp(agg, wa, ba, wb, bb):
        # Linear (BatchNorm folded in) -> ReLU -> Linear -> ReLU.
        # Weights may be bf16; cast the activation, accumulate in f32 on MXU.
        z = jnp.dot(agg.astype(wa.dtype), wa,
                    preferred_element_type=jnp.float32) + ba
        z = jnp.maximum(z, 0.0)
        z = jnp.dot(z.astype(wb.dtype), wb,
                    preferred_element_type=jnp.float32) + bb
        return jnp.maximum(z, 0.0)

    # ---- GIN layer 1 (aggregation = single matmul; self-term folded in adj) ----
    agg = jnp.dot(adj, x_ref[...], preferred_element_type=jnp.float32)
    h = mlp(agg, w1a_ref[...], b1a_ref[...], wpack_ref[0], bpack_ref[0])
    p1 = jnp.dot(pool, h, preferred_element_type=jnp.float32)        # [G, D]

    # ---- GIN layer 2 ----
    agg = jnp.dot(adj, h, preferred_element_type=jnp.float32)
    h = mlp(agg, wpack_ref[1], bpack_ref[1], wpack_ref[2], bpack_ref[2])
    p2 = jnp.dot(pool, h, preferred_element_type=jnp.float32)        # [G, D]

    # ---- GIN layer 3 ----
    agg = jnp.dot(adj, h, preferred_element_type=jnp.float32)
    h = mlp(agg, wpack_ref[3], bpack_ref[3], wpack_ref[4], bpack_ref[4])
    p3 = jnp.dot(pool, h, preferred_element_type=jnp.float32)        # [G, D]

    # lin1 applied to concat([p1, p2, p3]) — expressed as three matmuls on
    # static row-slices of lin1's weight (no in-kernel concat, same math).
    D = wpack_ref.shape[1]
    l1dt = l1w_ref.dtype
    y = (jnp.dot(p1.astype(l1dt), l1w_ref[0:D, :],
                 preferred_element_type=jnp.float32)
         + jnp.dot(p2.astype(l1dt), l1w_ref[D:2 * D, :],
                   preferred_element_type=jnp.float32)
         + jnp.dot(p3.astype(l1dt), l1w_ref[2 * D:3 * D, :],
                   preferred_element_type=jnp.float32)
         + l1b_ref[...])
    y = jnp.where(y > 0, y, NEG_SLOPE * y)   # F.leaky_relu; Dropout = identity (eval)

    # lin2: for the binary head (out_dim == 1) use VPU multiply + lane reduce
    # instead of an MXU matmul with a width-1 output column.
    l2wt = l2wt_ref[...]                      # [out_dim, 3D], pre-transposed
    if l2wt.shape[0] == 1:
        out = jnp.sum(y * l2wt, axis=-1, keepdims=True) + l2b_ref[...]
    else:
        out = lax.dot_general(y, l2wt, (((1,), (1,)), ((), ())),
                              preferred_element_type=jnp.float32) + l2b_ref[...]
    out_ref[...] = out.astype(out_ref.dtype)


def gin_forward(params, x, adj_plus, pool):
    """Full fused forward.  Returns shape [G] when out_dim == 1 (squeeze(1)),
    else [G, n_classes] (squeeze(1) is a no-op in that case)."""
    N, f_in = x.shape
    G = pool.shape[0]
    D = params["wpack"].shape[1]
    out_dim = params["l2wt"].shape[0]

    def _nbytes(a):
        return a.size * a.dtype.itemsize

    flops = 2 * (N * N * f_in + N * f_in * D + N * D * D       # layer 1
                 + 2 * (N * N * D + 2 * N * D * D)             # layers 2-3
                 + 3 * G * N * D                                # pools
                 + G * (3 * D) * (3 * D) + G * (3 * D) * out_dim)
    bytes_accessed = (_nbytes(x) + _nbytes(adj_plus) + _nbytes(pool)
                      + sum(_nbytes(v) for v in params.values())
                      + G * out_dim * 4)

    out = pl.pallas_call(
        _gin_forward_kernel,
        out_shape=jax.ShapeDtypeStruct((G, out_dim), jnp.float32),
        compiler_params=pltpu.CompilerParams(vmem_limit_bytes=16 * 1024 * 1024),
        cost_estimate=pl.CostEstimate(flops=flops, transcendentals=0,
                                      bytes_accessed=bytes_accessed),
    )(x, adj_plus, pool,
      params["w1a"], params["b1a"], params["wpack"], params["bpack"],
      params["l1w"], params["l1b"], params["l2wt"], params["l2b"])

    if out_dim == 1:
        return out[:, 0]   # matches h.squeeze(1)
    return out             # squeeze(1) is a no-op for n_classes > 2


gin_forward_jit = jax.jit(gin_forward)


# ----------------------------------------------------------------------------
# Parameter construction (deterministic; mirrors nn.Linear default init shapes)
# ----------------------------------------------------------------------------
def _linear_init(key, fan_in, fan_out):
    k_w, k_b = jax.random.split(key)
    lim = (1.0 / fan_in) ** 0.5
    w = jax.random.uniform(k_w, (fan_in, fan_out), jnp.float32, -lim, lim)
    b = jax.random.uniform(k_b, (1, fan_out), jnp.float32, -lim, lim)
    return w, b


def make_params(key, in_features, dim_h=128, n_classes=2):
    out_dim = n_classes if n_classes > 2 else 1
    ks = jax.random.split(key, 8)

    w1a, b1a = _linear_init(ks[0], in_features, dim_h)
    w1b, b1b = _linear_init(ks[1], dim_h, dim_h)
    w2a, b2a = _linear_init(ks[2], dim_h, dim_h)
    w2b, b2b = _linear_init(ks[3], dim_h, dim_h)
    w3a, b3a = _linear_init(ks[4], dim_h, dim_h)
    w3b, b3b = _linear_init(ks[5], dim_h, dim_h)
    l1w, l1b = _linear_init(ks[6], dim_h * 3, dim_h * 3)
    l2w, l2b = _linear_init(ks[7], dim_h * 3, out_dim)

    # Fold eval-mode BatchNorm1d (running_mean=0, running_var=1, gamma=1,
    # beta=0) into the first Linear of each GIN MLP: scale = 1/sqrt(1+eps).
    bn_scale = 1.0 / jnp.sqrt(jnp.float32(1.0 + 1e-5))
    w1a, b1a = w1a * bn_scale, b1a * bn_scale
    w2a, b2a = w2a * bn_scale, b2a * bn_scale
    w3a, b3a = w3a * bn_scale, b3a * bn_scale

    # Pack the five [dim_h, dim_h] MLP weights into one bf16 array (halves the
    # dominant weight-DMA bytes and cuts operand count); biases stay f32.
    wpack = jnp.stack([w1b, w2a, w2b, w3a, w3b]).astype(jnp.bfloat16)  # [5,D,D]
    bpack = jnp.stack([b1b, b2a, b2b, b3a, b3b])                       # [5,1,D]

    return {
        "w1a": w1a, "b1a": b1a,                 # f32 (tiny: in_features x D)
        "wpack": wpack, "bpack": bpack,
        "l1w": l1w.astype(jnp.bfloat16), "l1b": l1b,
        "l2wt": l2w.T, "l2b": l2b,              # l2 pre-transposed: [out_dim, 3D]
    }


# ----------------------------------------------------------------------------
# Graph glue: densify edge_index into a [dst, src] adjacency (sum duplicates,
# matching PyG multi-edge accumulation), with the (1+eps) self-term folded in,
# and build the sum-pooling matrix from the batch vector.
# ----------------------------------------------------------------------------
def densify_adj(edge_index, num_nodes):
    src, dst = edge_index[0], edge_index[1]
    adj = jnp.zeros((num_nodes, num_nodes), jnp.float32).at[dst, src].add(1.0)
    # Fold GINConv's (1 + eps) * x_i self-term into the adjacency diagonal.
    return adj + (1.0 + GIN_EPS) * jnp.eye(num_nodes, dtype=jnp.float32)


def pooling_matrix(batch, num_graphs):
    return (batch[None, :] == jnp.arange(num_graphs)[:, None]).astype(jnp.float32)


# ----------------------------------------------------------------------------
# Driver
# ----------------------------------------------------------------------------
if __name__ == "__main__":
    N = 16            # nodes (all graphs of the batch share one launch)
    IN_FEATURES = 8
    E = 40            # directed edges (no self loops)
    G = 2             # graphs in the batch
    DIM_H = 128       # module default dim_h

    key = jax.random.PRNGKey(0)
    k_x, k_e, k_p = jax.random.split(key, 3)

    x = jax.random.normal(k_x, (N, IN_FEATURES), jnp.float32)

    # unique directed edges without self loops
    cand = jnp.array([(s, d) for s in range(N) for d in range(N) if s != d],
                     dtype=jnp.int32)
    sel = jax.random.choice(k_e, cand.shape[0], shape=(E,), replace=False)
    edges = cand[sel]                     # [E, 2] = (src, dst)
    edge_index = edges.T                  # [2, E]

    batch = jnp.array([0] * (N // 2) + [1] * (N // 2), jnp.int32)   # [N]

    adj_plus = densify_adj(edge_index, N)   # [N, N] with self-term folded in
    pool = pooling_matrix(batch, G)         # [G, N]

    params = make_params(k_p, IN_FEATURES, dim_h=DIM_H, n_classes=2)

    out = gin_forward_jit(params, x, adj_plus, pool)
    jax.block_until_ready(out)
    assert out.shape == (G,) and out.dtype == jnp.float32
    print("KERNEL_OK")
</pallas_src>

<mosaic_0001>
module attributes {stable_mosaic.version = 11 : i64} {
  func.func @_gin_forward_kernel(%arg0: memref<16x8xf32, #tpu.memory_space<vmem>>, %arg1: memref<16x16xf32, #tpu.memory_space<vmem>>, %arg2: memref<2x16xf32, #tpu.memory_space<vmem>>, %arg3: memref<8x128xf32, #tpu.memory_space<vmem>>, %arg4: memref<1x128xf32, #tpu.memory_space<vmem>>, %arg5: memref<5x128x128xbf16, #tpu.memory_space<vmem>>, %arg6: memref<5x1x128xf32, #tpu.memory_space<vmem>>, %arg7: memref<384x384xbf16, #tpu.memory_space<vmem>>, %arg8: memref<1x384xf32, #tpu.memory_space<vmem>>, %arg9: memref<1x384xf32, #tpu.memory_space<vmem>>, %arg10: memref<1x1xf32, #tpu.memory_space<vmem>>, %arg11: memref<2x1xf32, #tpu.memory_space<vmem>>) attributes {dimension_semantics = [], scalar_prefetch = 0 : i64, scratch_operands = 0 : i64, tpu.core_type = #tpu.core_type<tc>} {
    %c0 = arith.constant 0 : index
    %c0_0 = arith.constant 0 : index
    %0 = vector.load %arg1[%c0, %c0_0] : memref<16x16xf32, #tpu.memory_space<vmem>>, vector<16x16xf32>
    %c0_1 = arith.constant 0 : index
    %c0_2 = arith.constant 0 : index
    %1 = vector.load %arg2[%c0_1, %c0_2] : memref<2x16xf32, #tpu.memory_space<vmem>>, vector<2x16xf32>
    %c0_3 = arith.constant 0 : index
    %c0_4 = arith.constant 0 : index
    %2 = vector.load %arg0[%c0_3, %c0_4] : memref<16x8xf32, #tpu.memory_space<vmem>>, vector<16x8xf32>
    %cst = arith.constant dense<0.000000e+00> : vector<16x8xf32>
    %3 = tpu.matmul %0, %2, %cst {dimension_numbers = #tpu.dot_dimension_numbers<[1], [0], [0], [1], [0, 0, 1, 1], [], []>} : vector<16x16xf32>, vector<16x8xf32>, vector<16x8xf32> -> vector<16x8xf32>
    %c0_5 = arith.constant 0 : index
    %c0_6 = arith.constant 0 : index
    %4 = vector.load %arg3[%c0_5, %c0_6] : memref<8x128xf32, #tpu.memory_space<vmem>>, vector<8x128xf32>
    %c0_7 = arith.constant 0 : index
    %c0_8 = arith.constant 0 : index
    %5 = vector.load %arg4[%c0_7, %c0_8] : memref<1x128xf32, #tpu.memory_space<vmem>>, vector<1x128xf32>
    %c0_9 = arith.constant 0 : index
    %c0_10 = arith.constant 0 : index
    %c0_11 = arith.constant 0 : index
    %6 = vector.load %arg5[%c0_9, %c0_10, %c0_11] : memref<5x128x128xbf16, #tpu.memory_space<vmem>>, vector<1x128x128xbf16>
    %7 = vector.shape_cast %6 : vector<1x128x128xbf16> to vector<128x128xbf16>
    %c0_12 = arith.constant 0 : index
    %c0_13 = arith.constant 0 : index
    %c0_14 = arith.constant 0 : index
    %8 = vector.load %arg6[%c0_12, %c0_13, %c0_14] : memref<5x1x128xf32, #tpu.memory_space<vmem>>, vector<1x1x128xf32>
    %9 = vector.shape_cast %8 : vector<1x1x128xf32> to vector<1x128xf32>
    %cst_15 = arith.constant dense<0.000000e+00> : vector<16x128xf32>
    %10 = tpu.matmul %3, %4, %cst_15 {dimension_numbers = #tpu.dot_dimension_numbers<[1], [0], [0], [1], [0, 0, 1, 1], [], []>} : vector<16x8xf32>, vector<8x128xf32>, vector<16x128xf32> -> vector<16x128xf32>
    %11 = vector.broadcast %5 : vector<1x128xf32> to vector<16x128xf32>
    %12 = arith.addf %10, %11 : vector<16x128xf32>
    %cst_16 = arith.constant 0.000000e+00 : f32
    %13 = vector.broadcast %cst_16 : f32 to vector<16x128xf32>
    %14 = arith.maximumf %12, %13 : vector<16x128xf32>
    %15 = arith.truncf %14 : vector<16x128xf32> to vector<16x128xbf16>
    %cst_17 = arith.constant dense<0.000000e+00> : vector<16x128xf32>
    %16 = tpu.matmul %15, %7, %cst_17 {dimension_numbers = #tpu.dot_dimension_numbers<[1], [0], [0], [1], [0, 0, 1, 1], [], []>} : vector<16x128xbf16>, vector<128x128xbf16>, vector<16x128xf32> -> vector<16x128xf32>
    %17 = vector.broadcast %9 : vector<1x128xf32> to vector<16x128xf32>
    %18 = arith.addf %16, %17 : vector<16x128xf32>
    %cst_18 = arith.constant 0.000000e+00 : f32
    %19 = vector.broadcast %cst_18 : f32 to vector<16x128xf32>
    %20 = arith.maximumf %18, %19 : vector<16x128xf32>
    %cst_19 = arith.constant dense<0.000000e+00> : vector<2x128xf32>
    %21 = tpu.matmul %1, %20, %cst_19 {dimension_numbers = #tpu.dot_dimension_numbers<[1], [0], [0], [1], [0, 0, 1, 1], [], []>} : vector<2x16xf32>, vector<16x128xf32>, vector<2x128xf32> -> vector<2x128xf32>
    %cst_20 = arith.constant dense<0.000000e+00> : vector<16x128xf32>
    %22 = tpu.matmul %0, %20, %cst_20 {dimension_numbers = #tpu.dot_dimension_numbers<[1], [0], [0], [1], [0, 0, 1, 1], [], []>} : vector<16x16xf32>, vector<16x128xf32>, vector<16x128xf32> -> vector<16x128xf32>
    %c1 = arith.constant 1 : index
    %c0_21 = arith.constant 0 : index
    %c0_22 = arith.constant 0 : index
    %23 = vector.load %arg5[%c1, %c0_21, %c0_22] : memref<5x128x128xbf16, #tpu.memory_space<vmem>>, vector<1x128x128xbf16>
    %24 = vector.shape_cast %23 : vector<1x128x128xbf16> to vector<128x128xbf16>
    %c1_23 = arith.constant 1 : index
    %c0_24 = arith.constant 0 : index
    %c0_25 = arith.constant 0 : index
    %25 = vector.load %arg6[%c1_23, %c0_24, %c0_25] : memref<5x1x128xf32, #tpu.memory_space<vmem>>, vector<1x1x128xf32>
    %26 = vector.shape_cast %25 : vector<1x1x128xf32> to vector<1x128xf32>
    %c2 = arith.constant 2 : index
    %c0_26 = arith.constant 0 : index
    %c0_27 = arith.constant 0 : index
    %27 = vector.load %arg5[%c2, %c0_26, %c0_27] : memref<5x128x128xbf16, #tpu.memory_space<vmem>>, vector<1x128x128xbf16>
    %28 = vector.shape_cast %27 : vector<1x128x128xbf16> to vector<128x128xbf16>
    %c2_28 = arith.constant 2 : index
    %c0_29 = arith.constant 0 : index
    %c0_30 = arith.constant 0 : index
    %29 = vector.load %arg6[%c2_28, %c0_29, %c0_30] : memref<5x1x128xf32, #tpu.memory_space<vmem>>, vector<1x1x128xf32>
    %30 = vector.shape_cast %29 : vector<1x1x128xf32> to vector<1x128xf32>
    %31 = arith.truncf %22 : vector<16x128xf32> to vector<16x128xbf16>
    %cst_31 = arith.constant dense<0.000000e+00> : vector<16x128xf32>
    %32 = tpu.matmul %31, %24, %cst_31 {dimension_numbers = #tpu.dot_dimension_numbers<[1], [0], [0], [1], [0, 0, 1, 1], [], []>} : vector<16x128xbf16>, vector<128x128xbf16>, vector<16x128xf32> -> vector<16x128xf32>
    %33 = vector.broadcast %26 : vector<1x128xf32> to vector<16x128xf32>
    %34 = arith.addf %32, %33 : vector<16x128xf32>
    %cst_32 = arith.constant 0.000000e+00 : f32
    %35 = vector.broadcast %cst_32 : f32 to vector<16x128xf32>
    %36 = arith.maximumf %34, %35 : vector<16x128xf32>
    %37 = arith.truncf %36 : vector<16x128xf32> to vector<16x128xbf16>
    %cst_33 = arith.constant dense<0.000000e+00> : vector<16x128xf32>
    %38 = tpu.matmul %37, %28, %cst_33 {dimension_numbers = #tpu.dot_dimension_numbers<[1], [0], [0], [1], [0, 0, 1, 1], [], []>} : vector<16x128xbf16>, vector<128x128xbf16>, vector<16x128xf32> -> vector<16x128xf32>
    %39 = vector.broadcast %30 : vector<1x128xf32> to vector<16x128xf32>
    %40 = arith.addf %38, %39 : vector<16x128xf32>
    %cst_34 = arith.constant 0.000000e+00 : f32
    %41 = vector.broadcast %cst_34 : f32 to vector<16x128xf32>
    %42 = arith.maximumf %40, %41 : vector<16x128xf32>
    %cst_35 = arith.constant dense<0.000000e+00> : vector<2x128xf32>
    %43 = tpu.matmul %1, %42, %cst_35 {dimension_numbers = #tpu.dot_dimension_numbers<[1], [0], [0], [1], [0, 0, 1, 1], [], []>} : vector<2x16xf32>, vector<16x128xf32>, vector<2x128xf32> -> vector<2x128xf32>
    %cst_36 = arith.constant dense<0.000000e+00> : vector<16x128xf32>
    %44 = tpu.matmul %0, %42, %cst_36 {dimension_numbers = #tpu.dot_dimension_numbers<[1], [0], [0], [1], [0, 0, 1, 1], [], []>} : vector<16x16xf32>, vector<16x128xf32>, vector<16x128xf32> -> vector<16x128xf32>
    %c3 = arith.constant 3 : index
    %c0_37 = arith.constant 0 : index
    %c0_38 = arith.constant 0 : index
    %45 = vector.load %arg5[%c3, %c0_37, %c0_38] : memref<5x128x128xbf16, #tpu.memory_space<vmem>>, vector<1x128x128xbf16>
    %46 = vector.shape_cast %45 : vector<1x128x128xbf16> to vector<128x128xbf16>
    %c3_39 = arith.constant 3 : index
    %c0_40 = arith.constant 0 : index
    %c0_41 = arith.constant 0 : index
    %47 = vector.load %arg6[%c3_39, %c0_40, %c0_41] : memref<5x1x128xf32, #tpu.memory_space<vmem>>, vector<1x1x128xf32>
    %48 = vector.shape_cast %47 : vector<1x1x128xf32> to vector<1x128xf32>
    %c4 = arith.constant 4 : index
    %c0_42 = arith.constant 0 : index
    %c0_43 = arith.constant 0 : index
    %49 = vector.load %arg5[%c4, %c0_42, %c0_43] : memref<5x128x128xbf16, #tpu.memory_space<vmem>>, vector<1x128x128xbf16>
    %50 = vector.shape_cast %49 : vector<1x128x128xbf16> to vector<128x128xbf16>
    %c4_44 = arith.constant 4 : index
    %c0_45 = arith.constant 0 : index
    %c0_46 = arith.constant 0 : index
    %51 = vector.load %arg6[%c4_44, %c0_45, %c0_46] : memref<5x1x128xf32, #tpu.memory_space<vmem>>, vector<1x1x128xf32>
    %52 = vector.shape_cast %51 : vector<1x1x128xf32> to vector<1x128xf32>
    %53 = arith.truncf %44 : vector<16x128xf32> to vector<16x128xbf16>
    %cst_47 = arith.constant dense<0.000000e+00> : vector<16x128xf32>
    %54 = tpu.matmul %53, %46, %cst_47 {dimension_numbers = #tpu.dot_dimension_numbers<[1], [0], [0], [1], [0, 0, 1, 1], [], []>} : vector<16x128xbf16>, vector<128x128xbf16>, vector<16x128xf32> -> vector<16x128xf32>
    %55 = vector.broadcast %48 : vector<1x128xf32> to vector<16x128xf32>
    %56 = arith.addf %54, %55 : vector<16x128xf32>
    %cst_48 = arith.constant 0.000000e+00 : f32
    %57 = vector.broadcast %cst_48 : f32 to vector<16x128xf32>
    %58 = arith.maximumf %56, %57 : vector<16x128xf32>
    %59 = arith.truncf %58 : vector<16x128xf32> to vector<16x128xbf16>
    %cst_49 = arith.constant dense<0.000000e+00> : vector<16x128xf32>
    %60 = tpu.matmul %59, %50, %cst_49 {dimension_numbers = #tpu.dot_dimension_numbers<[1], [0], [0], [1], [0, 0, 1, 1], [], []>} : vector<16x128xbf16>, vector<128x128xbf16>, vector<16x128xf32> -> vector<16x128xf32>
    %61 = vector.broadcast %52 : vector<1x128xf32> to vector<16x128xf32>
    %62 = arith.addf %60, %61 : vector<16x128xf32>
    %cst_50 = arith.constant 0.000000e+00 : f32
    %63 = vector.broadcast %cst_50 : f32 to vector<16x128xf32>
    %64 = arith.maximumf %62, %63 : vector<16x128xf32>
    %cst_51 = arith.constant dense<0.000000e+00> : vector<2x128xf32>
    %65 = tpu.matmul %1, %64, %cst_51 {dimension_numbers = #tpu.dot_dimension_numbers<[1], [0], [0], [1], [0, 0, 1, 1], [], []>} : vector<2x16xf32>, vector<16x128xf32>, vector<2x128xf32> -> vector<2x128xf32>
    %66 = arith.truncf %21 : vector<2x128xf32> to vector<2x128xbf16>
    %c0_52 = arith.constant 0 : index
    %c0_53 = arith.constant 0 : index
    %67 = vector.load %arg7[%c0_52, %c0_53] : memref<384x384xbf16, #tpu.memory_space<vmem>>, vector<128x384xbf16>
    %cst_54 = arith.constant dense<0.000000e+00> : vector<2x384xf32>
    %68 = tpu.matmul %66, %67, %cst_54 {dimension_numbers = #tpu.dot_dimension_numbers<[1], [0], [0], [1], [0, 0, 1, 1], [], []>} : vector<2x128xbf16>, vector<128x384xbf16>, vector<2x384xf32> -> vector<2x384xf32>
    %69 = arith.truncf %43 : vector<2x128xf32> to vector<2x128xbf16>
    %c128 = arith.constant 128 : index
    %c0_55 = arith.constant 0 : index
    %70 = vector.load %arg7[%c128, %c0_55] : memref<384x384xbf16, #tpu.memory_space<vmem>>, vector<128x384xbf16>
    %cst_56 = arith.constant dense<0.000000e+00> : vector<2x384xf32>
    %71 = tpu.matmul %69, %70, %cst_56 {dimension_numbers = #tpu.dot_dimension_numbers<[1], [0], [0], [1], [0, 0, 1, 1], [], []>} : vector<2x128xbf16>, vector<128x384xbf16>, vector<2x384xf32> -> vector<2x384xf32>
    %72 = arith.addf %68, %71 : vector<2x384xf32>
    %73 = arith.truncf %65 : vector<2x128xf32> to vector<2x128xbf16>
    %c256 = arith.constant 256 : index
    %c0_57 = arith.constant 0 : index
    %74 = vector.load %arg7[%c256, %c0_57] : memref<384x384xbf16, #tpu.memory_space<vmem>>, vector<128x384xbf16>
    %cst_58 = arith.constant dense<0.000000e+00> : vector<2x384xf32>
    %75 = tpu.matmul %73, %74, %cst_58 {dimension_numbers = #tpu.dot_dimension_numbers<[1], [0], [0], [1], [0, 0, 1, 1], [], []>} : vector<2x128xbf16>, vector<128x384xbf16>, vector<2x384xf32> -> vector<2x384xf32>
    %76 = arith.addf %72, %75 : vector<2x384xf32>
    %c0_59 = arith.constant 0 : index
    %c0_60 = arith.constant 0 : index
    %77 = vector.load %arg8[%c0_59, %c0_60] : memref<1x384xf32, #tpu.memory_space<vmem>>, vector<1x384xf32>
    %78 = vector.broadcast %77 : vector<1x384xf32> to vector<2x384xf32>
    %79 = arith.addf %76, %78 : vector<2x384xf32>
    %cst_61 = arith.constant 0.000000e+00 : f32
    %80 = vector.broadcast %cst_61 : f32 to vector<2x384xf32>
    %81 = arith.cmpf ogt, %79, %80 : vector<2x384xf32>
    %cst_62 = arith.constant 0.00999999977 : f32
    %82 = vector.broadcast %cst_62 : f32 to vector<2x384xf32>
    %83 = arith.mulf %82, %79 : vector<2x384xf32>
    %84 = arith.select %81, %79, %83 : vector<2x384xi1>, vector<2x384xf32>
    %c0_63 = arith.constant 0 : index
    %c0_64 = arith.constant 0 : index
    %85 = vector.load %arg9[%c0_63, %c0_64] : memref<1x384xf32, #tpu.memory_space<vmem>>, vector<1x384xf32>
    %86 = vector.broadcast %85 : vector<1x384xf32> to vector<2x384xf32>
    %87 = arith.mulf %84, %86 : vector<2x384xf32>
    %cst_65 = arith.constant dense<0.000000e+00> : vector<2xf32>
    %88 = vector.multi_reduction <add>, %87, %cst_65 [1] : vector<2x384xf32> to vector<2xf32>
    %89 = vector.shape_cast %88 : vector<2xf32> to vector<2x1xf32>
    %c0_66 = arith.constant 0 : index
    %c0_67 = arith.constant 0 : index
    %90 = vector.load %arg10[%c0_66, %c0_67] : memref<1x1xf32, #tpu.memory_space<vmem>>, vector<1x1xf32>
    %91 = vector.broadcast %90 : vector<1x1xf32> to vector<2x1xf32>
    %92 = arith.addf %89, %91 : vector<2x1xf32>
    %c0_68 = arith.constant 0 : index
    %c0_69 = arith.constant 0 : index
    %93 = vector.load %arg11[%c0_68, %c0_69] : memref<2x1xf32, #tpu.memory_space<vmem>>, vector<2x1xf32>
    tpu.vector_store %arg11[%c0_68, %c0_69], %92 {strides = array<i32>} : memref<2x1xf32, #tpu.memory_space<vmem>>, vector<2x1xf32>,
    return
  }
}

</mosaic_0001>

<bundles_post_ra>
// kernel: gin_forward.1
= control target key start
LH: loop header
LB: loop body
LE: loop exit
PB: predicated region body
PF: predicated region fallthrough
CT: control target
= control target key end

     0   :  { %s2949_s0 = inlined_call_operand.vmem [shape: f32[16,8], index: 0, kind: input, shape index: {}]   ;;  %s2950_s1 = inlined_call_operand.vmem [shape: f32[16,16], index: 1, kind: input, shape index: {}]   ;;  %s2951_s2 = inlined_call_operand.vmem [shape: f32[2,16], index: 2, kind: input, shape index: {}]   ;;  %s2952_s3 = inlined_call_operand.vmem [shape: f32[8,128], index: 3, kind: input, shape index: {}]   ;;  %s2953_s4 = inlined_call_operand.vmem [shape: f32[1,128], index: 4, kind: input, shape index: {}]   ;;  %s2954_s5 = inlined_call_operand.hbm [shape: bf16[5,128,128], index: 5, kind: input, shape index: {}]   ;;  %s2955_s6 = inlined_call_operand.vmem [shape: f32[5,1,128], index: 6, kind: input, shape index: {}]   ;;  %s2956_s7 = inlined_call_operand.hbm [shape: bf16[384,384], index: 7, kind: input, shape index: {}]   ;;  %s2957_s8 = inlined_call_operand.hbm [shape: f32[1,384], index: 8, kind: input, shape index: {}]   ;;  %s2958_s9 = inlined_call_operand.hbm [shape: f32[1,384], index: 9, kind: input, shape index: {}]   ;;  %s2959_s10 = inlined_call_operand.<no memory space> [shape: f32[1,1], index: 10, kind: input, shape index: {}]   ;;  %s2960_s11 = inlined_call_operand.vmem [shape: f32[2,1], index: 11, kind: output, shape index: {}]  }
   0x1   :  { %v16_v0 = vstv %s2959_s10 }
   0x2   :  { %17 = vst [vmem:[#allocation2] sm:$0x1] %v16_v0 }
   0x3   :  { %18 = vsyncpa [#allocation4], 0 }
   0x4   :  { %19 = vsyncpa [#allocation6], 0 }
   0x5   :  { %20 = vsyncpa [#allocation9], 0  ;;  %s2690_s19 = smov [#allocation5]  }
   0x6   :  { %s50_s20 = sshll.u32 %s2690_s19, 4  ;;  %s51_s20 = int_to_ptr.vmem [resolvable:$true] %s50_s20 }
   0x7   :  { %s2612_s21 = scalar_lea.vmem %s51_s20, 9216  ;;  %p2617_p1 = scmp.lt.s32.totalorder %s51_s20, %s51_s20 }
   0x8   :  { %p2613_p0 = scmp.ne.s32.totalorder %s51_s20, %s2612_s21  ;;  %p2618_p2 = scmp.lt.s32.totalorder %s2612_s21, %s2612_s21 }
   0xa   :  { %p2619_p3 = por %p2618_p2, %p2617_p1 }
   0xc   :  { %p2620_p4 = pnand %p2619_p3, %p2613_p0 }
   0xe   :  { %2623 = shalt.err (!%p2620_p4)
}
   0xf   :  { %s2691_s22 = smov 192   ;;  %s2692_s23 = smov 12  }
  0x10   :  { %56 = dma.hbm_to_vmem [thread:$0]  %s2956_s7, 9216, %s51_s20, [#allocation6], %s2691_s22, %s2691_s22, %s2692_s23  }
  0x11   :  { %s2693_s10 = smov [#allocation3]  }
  0x12   :  { %s36_s26 = sshll.u32 %s2693_s10, 4  ;;  %s37_s26 = int_to_ptr.vmem [resolvable:$true] %s36_s26 }
  0x13   :  { %s2632_s27 = scalar_lea.vmem %s37_s26, 5120  ;;  %p2637_p6 = scmp.lt.s32.totalorder %s37_s26, %s37_s26 }
  0x14   :  { %p2633_p5 = scmp.ne.s32.totalorder %s37_s26, %s2632_s27  ;;  %p2638_p7 = scmp.lt.s32.totalorder %s2632_s27, %s2632_s27 }
  0x16   :  { %p2639_p8 = por %p2638_p7, %p2637_p6 }
  0x18   :  { %p2640_p9 = pnand %p2639_p8, %p2633_p5 }
  0x1a   :  { %2643 = shalt.err (!%p2640_p9)
}
  0x1b   :  { %s2694_s28 = smov 64   ;;  %s2695_s29 = smov 4  }
  0x1c   :  { %42 = dma.hbm_to_vmem [thread:$0]  %s2954_s5, 5120, %s37_s26, [#allocation4], %s2694_s28, %s2694_s28, %s2695_s29  }
  0x1d   :  { %s2696_s13 = smov [#allocation7]   ;;  %s2697_s15 = smov [#allocation8]  }
  0x1e   :  { %s63_s14 = sshll.u32 %s2696_s13, 4  ;;  %s73_s7 = sshll.u32 %s2697_s15, 4  ;;  %s64_s14 = int_to_ptr.vmem [resolvable:$true] %s63_s14  ;;  %s74_s7 = int_to_ptr.vmem [resolvable:$true] %s73_s7 }
  0x1f   :  { %s2652_s16 = scalar_lea.vmem %s64_s14, 48  ;;  %s2656_s17 = scalar_lea.vmem %s64_s14, 64 }
  0x20   :  { %p2653_p10 = scmp.ne.s32.totalorder %s64_s14, %s2652_s16  ;;  %p2657_p11 = scmp.lt.s32.totalorder %s64_s14, %s64_s14 }
  0x21   :  { %p2658_p12 = scmp.lt.s32.totalorder %s2656_s17, %s2652_s16 }
  0x23   :  { %p2659_p13 = por %p2658_p12, %p2657_p11 }
  0x25   :  { %p2660_p0 = pnand %p2659_p13, %p2653_p10 }
  0x27   :  { %2663 = shalt.err (!%p2660_p0)
}
  0x28   :  { %66 = dma.hbm_to_vmem [thread:$0]  %s2957_s8, 48, %s64_s14, [#allocation6]  }
  0x29   :  { %s2672_s20 = scalar_lea.vmem %s74_s7, 48  ;;  %s2676_s5 = scalar_lea.vmem %s74_s7, 64 }
  0x2a   :  { %p2673_p1 = scmp.ne.s32.totalorder %s74_s7, %s2672_s20  ;;  %p2677_p2 = scmp.lt.s32.totalorder %s74_s7, %s74_s7 }
  0x2b   :  { %p2678_p3 = scmp.lt.s32.totalorder %s2676_s5, %s2672_s20 }
  0x2d   :  { %p2679_p4 = por %p2678_p3, %p2677_p2 }
  0x2f   :  { %p2680_p5 = pnand %p2679_p4, %p2673_p1 }
  0x31   :  { %2683 = shalt.err (!%p2680_p5)
}
  0x32   :  { %76 = dma.hbm_to_vmem [thread:$0]  %s2958_s9, 48, %s74_s7, [#allocation9]  }
  0x33   :  { %2684 = dma.done.wait [#allocation4], 5120  }
  0x34   :  { %2685 = vsyncadd [#allocation4], 4294962176 }
  0x35   :  { %2686 = dma.done.wait [#allocation6], 9264  }
  0x36   :  { %2687 = vsyncadd [#allocation6], 4294958032 }
  0x37   :  { %2688 = dma.done.wait [#allocation9], 48  }
  0x38   :  { %2689 = vsyncadd [#allocation9], 4294967248  ;;  %vm97_vm0 = vcmask 130048   ;;  %v96_v1 = vld [vmem:[%s2949_s0 + $0x8] sm:$0xff]  ;;  %v95_v2 = vld [vmem:[%s2949_s0] sm:$0xff]  ;;  %v2698_v6 = vmov 0.0  }
  0x39   :  { %v2785_v3 = vld [vmem:[%s2950_s1] sm:$0xff]  ;;  %2250 = vmatprep.subr.mxu0 %v96_v1  ;;  %v2792_v4 = vld [vmem:[%s2950_s1 + $0x8] sm:$0xff]  ;;  %vm204_vm1 = vcmask 64512   ;;  %v2469_v10 = vld [vmem:[#allocation3 + $0x30] sm:$0xff]   ;;  %vm2699_vm2 = vmmov 0   ;;  %vm1995_vm6 = vcmask 1041408  }
  0x3a   :  { %2254 = vmatprep.mubr.msk.f32.mxu0 %vm97_vm0, %v2785_v3  ;;  %2251 = vmatpush3.msra.mxu0 %v96_v1  ;;  %v179_v5 = vld [vmem:[%s2952_s3] sm:$0xff]  ;;  %v2470_v11 = vld [vmem:[#allocation3 + $0x28] sm:$0xff]   ;;  %v2473_v14 = vld [vmem:[#allocation3 + $0x10] sm:$0xff]   ;;  %vm2011_vm7 = vcmask 1024  }
  0x3b   :  { %2252 = vmatprep.subr.mxu0 %v95_v2  ;;  %2257 = vmatprep.subr.mxu1 %v179_v5  ;;  %v2468_v8 = vld [vmem:[#allocation3 + $0x38] sm:$0xff]   ;;  %v2471_v12 = vld [vmem:[#allocation3 + $0x20] sm:$0xff]   ;;  %v2474_v15 = vld [vmem:[#allocation3 + $0x8] sm:$0xff]  }
  0x3c   :  { %2253 = vmatpush3.msra.mxu0 %v95_v2  ;;  %2258 = vmatpush3.msra.mxu1 %v179_v5  ;;  %v2472_v13 = vld [vmem:[#allocation3 + $0x18] sm:$0xff]   ;;  %v2475_v16 = vld [vmem:[#allocation3] sm:$0xff]   ;;  %v2477_v36 = vld [vmem:[#allocation3 + $0x70] sm:$0xff]  }
  0x3d   :  { %2255 = vmatmul.mubr.msk.f32.vlgmr.msra.gmra.mxu0 %vm97_vm0, %v2792_v4  ;;  %2262 = vmatprep.subr.bf16.mxu1 %v2698_v6  ;;  %v2022_v17 = vld [vmem:[%s2953_s4] ss:$0 sm:$0xff]  ;;  %v2478_v37 = vld [vmem:[#allocation3 + $0x68] sm:$0xff]   ;;  %v2479_v38 = vld [vmem:[#allocation3 + $0x60] sm:$0xff]  }
  0x3e   :  { %2282 = vmatprep.subr.mxu0 %v2698_v6  ;;  %2286 = vmatprep.mubr.msk.f32.mxu0 %vm2699_vm2, %v2698_v6  ;;  %v2025_v26 = vld [vmem:[%s2955_s6] ss:$0 sm:$0xff]  ;;  %v2481_v40 = vld [vmem:[#allocation3 + $0x50] sm:$0xff]   ;;  %v2482_v41 = vld [vmem:[#allocation3 + $0x48] sm:$0xff]  }
  0x3f   :  { %v2824_v34 = vld [vmem:[%s2951_s2] sm:$0x3]  ;;  %v2485_v44 = vld [vmem:[#allocation3 + $0xb0] sm:$0xff]   ;;  %v2486_v45 = vld [vmem:[#allocation3 + $0xa8] sm:$0xff]  }
  0x40   :  { %v2476_v35 = vld [vmem:[#allocation3 + $0x78] sm:$0xff]   ;;  %v2483_v42 = vld [vmem:[#allocation3 + $0x40] sm:$0xff]   ;;  %v2489_v53 = vld [vmem:[#allocation3 + $0x90] sm:$0xff]  }
  0x41   :  { %v2480_v39 = vld [vmem:[#allocation3 + $0x58] sm:$0xff]   ;;  %v2487_v46 = vld [vmem:[#allocation3 + $0xa0] sm:$0xff]   ;;  %v2490_v54 = vld [vmem:[#allocation3 + $0x88] sm:$0xff]  }
  0x42   :  { %v2484_v43 = vld [vmem:[#allocation3 + $0xb8] sm:$0xff]   ;;  %v2491_v55 = vld [vmem:[#allocation3 + $0x80] sm:$0xff]  }
  0x43   :  { %v2488_v47 = vld [vmem:[#allocation3 + $0x98] sm:$0xff]   ;;  %v2039_v56 = vld [vmem:[%s2955_s6 + $0x1] ss:$0 sm:$0xff]  ;;  %v2048_v5 = vld [vmem:[%s2955_s6 + $0x2] ss:$0 sm:$0xff] }
  0xfd   :  { %v2256_v7 = vpop.f32.mrf.mxu0 }
  0xff   :  { %v170_v9 = vpop.f32.mrf.mxu0 }
 0x100   :  { %2259 = vmatprep.mubr.msk.f32.mxu1 %vm204_vm1, %v170_v9 }
 0x101   :  { %2260 = vmatmul.mubr.msk.f32.vlgmr.msra.gmra.mxu1 %vm204_vm1, %v2256_v7 }
 0x102   :  { %2263 = vmatpush3.bf16.msra.mxu1 %v2468_v8  ;;  %2278 = vmatprep.mubr.msk.bf16.mxu1 %vm2699_vm2, %v2698_v6 }
 0x103   :  { %2264 = vmatprep.subr.bf16.mxu1 %v2698_v6 }
 0x106   :  { %2265 = vmatpush3.bf16.msra.mxu1 %v2469_v10 }
 0x107   :  { %2266 = vmatprep.subr.bf16.mxu1 %v2698_v6 }
 0x10a   :  { %2267 = vmatpush3.bf16.msra.mxu1 %v2470_v11 }
 0x10b   :  { %2268 = vmatprep.subr.bf16.mxu1 %v2698_v6 }
 0x10e   :  { %2269 = vmatpush3.bf16.msra.mxu1 %v2471_v12 }
 0x10f   :  { %2270 = vmatprep.subr.bf16.mxu1 %v2698_v6 }
 0x112   :  { %2271 = vmatpush3.bf16.msra.mxu1 %v2472_v13 }
 0x113   :  { %2272 = vmatprep.subr.bf16.mxu1 %v2698_v6 }
 0x116   :  { %2273 = vmatpush3.bf16.msra.mxu1 %v2473_v14  ;;  %v2492_v14 = vld [vmem:[#allocation3 + $0xf8] sm:$0xff]  }
 0x117   :  { %2274 = vmatprep.subr.bf16.mxu1 %v2698_v6 }
 0x11a   :  { %2275 = vmatpush3.bf16.msra.mxu1 %v2474_v15  ;;  %v2493_v15 = vld [vmem:[#allocation3 + $0xf0] sm:$0xff]  }
 0x11b   :  { %2276 = vmatprep.subr.bf16.mxu1 %v2698_v6 }
 0x11e   :  { %2277 = vmatpush3.bf16.msra.mxu1 %v2475_v16  ;;  %v2494_v16 = vld [vmem:[#allocation3 + $0xe8] sm:$0xff]  }
 0x11f   :  { %2316 = vmatprep.subr.bf16.mxu1 %v2698_v6 }
 0x1c1   :  { %v2261_v18 = vpop.f32.mrf.mxu1 }
 0x1c2   :  { %v283_v19 = vadd.f32 %v2261_v18, %v2022_v17  ;;  %v2498_v18 = vld [vmem:[#allocation3 + $0xc8] sm:$0xff]  }
 0x1c3   :  { %v277_v20 = vpop.f32.mrf.mxu1 }
 0x1c4   :  { %v278_v21 = vadd.f32 %v2022_v17, %v277_v20  ;;  %v287_v22 = vmax.f32 %v283_v19, 0.0  ;;  %v2496_v17 = vld [vmem:[#allocation3 + $0xd8] sm:$0xff]   ;;  %v2499_v19 = vld [vmem:[#allocation3 + $0xc0] sm:$0xff]  }
 0x1c5   :  { %v2500_v20 = vld [vmem:[#allocation3 + $0x138] sm:$0xff]  }
 0x1c6   :  { %v286_v23 = vmax.f32 %v278_v21, 0.0  ;;  %v2501_v21 = vld [vmem:[#allocation3 + $0x130] sm:$0xff]  }
 0x1c8   :  { %v288_v24 = vpack.c.bf16 %v287_v22, %v286_v23  ;;  %v2502_v22 = vld [vmem:[#allocation3 + $0x128] sm:$0xff]   ;;  %v2503_v23 = vld [vmem:[#allocation3 + $0x120] sm:$0xff]  }
 0x1ca   :  { %2279 = vmatmul.mubr.bf16.vlgmr.msra.gmra.mxu1 %v288_v24  ;;  %v2504_v24 = vld [vmem:[#allocation3 + $0x118] sm:$0xff]  }
 0x1cb   :  { %2332 = vmatprep.mubr.msk.bf16.mxu1 %vm2699_vm2, %v2698_v6  ;;  %2317 = vmatpush3.bf16.msra.mxu1 %v2484_v43  ;;  %v2508_v43 = vld [vmem:[#allocation5 + $0x170] ss:$12 sps:$4 sm:$0xff]  }
 0x1cc   :  { %2318 = vmatprep.subr.bf16.mxu1 %v2698_v6 }
 0x1cf   :  { %2319 = vmatpush3.bf16.msra.mxu1 %v2485_v44 }
 0x1d0   :  { %2320 = vmatprep.subr.bf16.mxu1 %v2698_v6 }
 0x1d3   :  { %2321 = vmatpush3.bf16.msra.mxu1 %v2486_v45  ;;  %v2509_v45 = vld [vmem:[#allocation5 + $0x158] ss:$12 sps:$4 sm:$0xff]  }
 0x1d4   :  { %2322 = vmatprep.subr.bf16.mxu1 %v2698_v6 }
 0x1d7   :  { %2323 = vmatpush3.bf16.msra.mxu1 %v2487_v46  ;;  %v2510_v46 = vld [vmem:[#allocation5 + $0x140] ss:$12 sps:$4 sm:$0xff]  }
 0x1d8   :  { %2324 = vmatprep.subr.bf16.mxu1 %v2698_v6 }
 0x1db   :  { %2325 = vmatpush3.bf16.msra.mxu1 %v2488_v47  ;;  %v2511_v47 = vld [vmem:[#allocation5 + $0x128] ss:$12 sps:$4 sm:$0xff]  }
 0x1dc   :  { %2326 = vmatprep.subr.bf16.mxu1 %v2698_v6 }
 0x1df   :  { %2327 = vmatpush3.bf16.msra.mxu1 %v2489_v53  ;;  %v2516_v53 = vld [vmem:[#allocation5 + $0xb0] ss:$12 sps:$4 sm:$0xff]  }
 0x1e0   :  { %2328 = vmatprep.subr.bf16.mxu1 %v2698_v6 }
 0x1e3   :  { %2329 = vmatpush3.bf16.msra.mxu1 %v2490_v54 }
 0x1e4   :  { %2330 = vmatprep.subr.bf16.mxu1 %v2698_v6 }
 0x1e7   :  { %2331 = vmatpush3.bf16.msra.mxu1 %v2491_v55  ;;  %v2517_v55 = vld [vmem:[#allocation5 + $0x98] ss:$12 sps:$4 sm:$0xff]  }
 0x1e8   :  { %2370 = vmatprep.subr.bf16.mxu1 %v2698_v6 }
 0x28a   :  { %v377_v25 = vpop.f32.mrf.mxu1 }
 0x28b   :  { %v378_v29 = vadd.f32 %v2025_v26, %v377_v25  ;;  %v2505_v25 = vld [vmem:[#allocation3 + $0x110] sm:$0xff]  }
 0x28c   :  { %v2280_v27 = vpop.f32.mrf.mxu1 }
 0x28d   :  { %v384_v33 = vmax.f32 %v378_v29, 0.0 }
 0x28e   :  { %v380_v28 = vpop.f32.mrf.mxu1 }
 0x28f   :  { %v381_v30 = vadd.f32 %v2025_v26, %v380_v28 }
 0x290   :  { %v2281_v31 = vpop.f32.mrf.mxu1 }
 0x291   :  { %v385_v32 = vmax.f32 %v381_v30, 0.0  ;;  %v2506_v31 = vld [vmem:[#allocation3 + $0x108] sm:$0xff]  }
 0x293   :  { %2283 = vmatpush3.msra.mxu0 %v385_v32 }
 0x294   :  { %2284 = vmatprep.subr.mxu0 %v2698_v6 }
 0x295   :  { %2285 = vmatpush3.msra.mxu0 %v384_v33 }
 0x296   :  { %2287 = vmatmul.mubr.msk.f32.vlgmr.msra.gmra.mxu0 %vm97_vm0, %v2824_v34  ;;  %2289 = vmatprep.subr.mxu0 %v385_v32 }
 0x297   :  { %2290 = vmatpush3.msra.mxu0 %v385_v32  ;;  %2293 = vmatprep.mubr.msk.f32.mxu0 %vm97_vm0, %v2785_v3  ;;  %v2507_v32 = vld [vmem:[#allocation3 + $0x100] sm:$0xff]  }
 0x298   :  { %2291 = vmatprep.subr.mxu0 %v384_v33 }
 0x299   :  { %2292 = vmatpush3.msra.mxu0 %v384_v33  ;;  %v2062_v33 = vld [vmem:[%s2955_s6 + $0x3] ss:$0 sm:$0xff] }
 0x29a   :  { %2294 = vmatmul.mubr.msk.f32.vlgmr.msra.gmra.mxu0 %vm97_vm0, %v2792_v4  ;;  %2296 = vmatprep.subr.bf16.mxu0 %v2698_v6 }
 0x29b   :  { %2297 = vmatpush3.bf16.msra.mxu0 %v2476_v35  ;;  %2312 = vmatprep.mubr.msk.bf16.mxu0 %vm2699_vm2, %v2698_v6 }
 0x29c   :  { %2298 = vmatprep.subr.bf16.mxu0 %v2698_v6 }
 0x29f   :  { %2299 = vmatpush3.bf16.msra.mxu0 %v2477_v36 }
 0x2a0   :  { %2300 = vmatprep.subr.bf16.mxu0 %v2698_v6 }
 0x2a3   :  { %2301 = vmatpush3.bf16.msra.mxu0 %v2478_v37 }
 0x2a4   :  { %2302 = vmatprep.subr.bf16.mxu0 %v2698_v6 }
 0x2a7   :  { %2303 = vmatpush3.bf16.msra.mxu0 %v2479_v38 }
 0x2a8   :  { %2304 = vmatprep.subr.bf16.mxu0 %v2698_v6 }
 0x2ab   :  { %2305 = vmatpush3.bf16.msra.mxu0 %v2480_v39 }
 0x2ac   :  { %2306 = vmatprep.subr.bf16.mxu0 %v2698_v6 }
 0x2af   :  { %2307 = vmatpush3.bf16.msra.mxu0 %v2481_v40 }
 0x2b0   :  { %2308 = vmatprep.subr.bf16.mxu0 %v2698_v6 }
 0x2b3   :  { %2309 = vmatpush3.bf16.msra.mxu0 %v2482_v41 }
 0x2b4   :  { %2310 = vmatprep.subr.bf16.mxu0 %v2698_v6 }
 0x2b7   :  { %2311 = vmatpush3.bf16.msra.mxu0 %v2483_v42 }
 0x2b8   :  { %2336 = vmatprep.subr.mxu0 %v2698_v6 }
 0x356   :  { %v2849_v48 = vpop.f32.mrf.mxu0 }
 0x358   :  { %v2288_v49 = vpop.f32.mrf.mxu0 }
 0x359   :  { %v2512_v49 = vld [vmem:[#allocation5 + $0x110] ss:$12 sps:$4 sm:$0xff]  }
 0x35a   :  { %v2295_v50 = vpop.f32.mrf.mxu0 }
 0x35c   :  { %v525_v51 = vpop.f32.mrf.mxu0 }
 0x35d   :  { %v572_v52 = vpack.c.bf16 %v2295_v50, %v525_v51  ;;  %v2513_v50 = vld [vmem:[#allocation5 + $0xf8] ss:$12 sps:$4 sm:$0xff]   ;;  %v2514_v51 = vld [vmem:[#allocation5 + $0xe0] ss:$12 sps:$4 sm:$0xff]  }
 0x35f   :  { %2313 = vmatmul.mubr.bf16.vlgmr.msra.gmra.mxu0 %v572_v52  ;;  %v2515_v52 = vld [vmem:[#allocation5 + $0xc8] ss:$12 sps:$4 sm:$0xff]  }
 0x360   :  { %2340 = vmatprep.mubr.msk.f32.mxu0 %vm2699_vm2, %v2698_v6 }
 0x41f   :  { %v661_v57 = vpop.f32.mrf.mxu0 }
 0x420   :  { %v662_v59 = vadd.f32 %v2039_v56, %v661_v57  ;;  %v2519_v57 = vld [vmem:[#allocation5 + $0x68] ss:$12 sps:$4 sm:$0xff]  }
 0x421   :  { %v2314_v58 = vpop.f32.mrf.mxu0 }
 0x422   :  { %v668_v63 = vmax.f32 %v662_v59, 0.0  ;;  %v2520_v58 = vld [vmem:[#allocation5 + $0x50] ss:$12 sps:$4 sm:$0xff]   ;;  %v2521_v59 = vld [vmem:[#allocation5 + $0x38] ss:$12 sps:$4 sm:$0xff]  }
 0x423   :  { %v664_v60 = vpop.f32.mrf.mxu0 }
 0x424   :  { %v665_v61 = vadd.f32 %v2039_v56, %v664_v60  ;;  %v2518_v56 = vld [vmem:[#allocation5 + $0x80] ss:$12 sps:$4 sm:$0xff]  }
 0x425   :  { %v2315_v62 = vpop.f32.mrf.mxu0  ;;  %v2522_v60 = vld [vmem:[#allocation5 + $0x20] ss:$12 sps:$4 sm:$0xff]  }
 0x426   :  { %v669_v0 = vmax.f32 %v665_v61, 0.0  ;;  %v2523_v61 = vld [vmem:[#allocation5 + $0x8] ss:$12 sps:$4 sm:$0xff]   ;;  %v2919_v62 = vpack.c.bf16 %v2849_v48, %v2849_v48 }
 0x427   :  { %v2587_v48 = vld [vmem:[#allocation5 + $0x1e8] ss:$12 sps:$4 sm:$0xff]  }
 0x428   :  { %v670_v1 = vpack.c.bf16 %v669_v0, %v668_v63  ;;  %v2575_v63 = vld [vmem:[#allocation5 + $0x230] ss:$12 sps:$4 sm:$0xff]   ;;  %v2579_v0 = vld [vmem:[#allocation5 + $0x218] ss:$12 sps:$4 sm:$0xff]  }
 0x42a   :  { %2333 = vmatmul.mubr.bf16.vlgmr.msra.gmra.mxu1 %v670_v1  ;;  %v2583_v1 = vld [vmem:[#allocation5 + $0x200] ss:$12 sps:$4 sm:$0xff]  }
 0x42b   :  { %2386 = vmatprep.mubr.msk.bf16.mxu1 %vm2699_vm2, %v2698_v6  ;;  %2371 = vmatpush3.bf16.msra.mxu1 %v2500_v20  ;;  %v2532_v20 = vld [vmem:[#allocation5 + $0x13c] ss:$12 sps:$4 sm:$0xff]  }
 0x42c   :  { %2372 = vmatprep.subr.bf16.mxu1 %v2698_v6 }
 0x42f   :  { %2373 = vmatpush3.bf16.msra.mxu1 %v2501_v21  ;;  %v2530_v21 = vld [vmem:[#allocation5 + $0x138] ss:$12 sps:$4 sm:$0xff]  }
 0x430   :  { %2374 = vmatprep.subr.bf16.mxu1 %v2698_v6 }
 0x433   :  { %2375 = vmatpush3.bf16.msra.mxu1 %v2502_v22  ;;  %v2535_v22 = vld [vmem:[#allocation5 + $0x124] ss:$12 sps:$4 sm:$0xff]  }
 0x434   :  { %2376 = vmatprep.subr.bf16.mxu1 %v2698_v6 }
 0x437   :  { %2377 = vmatpush3.bf16.msra.mxu1 %v2503_v23  ;;  %v2533_v23 = vld [vmem:[#allocation5 + $0x120] ss:$12 sps:$4 sm:$0xff]  }
 0x438   :  { %2378 = vmatprep.subr.bf16.mxu1 %v2698_v6 }
 0x43b   :  { %2379 = vmatpush3.bf16.msra.mxu1 %v2504_v24  ;;  %v2536_v24 = vld [vmem:[#allocation5 + $0x108] ss:$12 sps:$4 sm:$0xff]  }
 0x43c   :  { %2380 = vmatprep.subr.bf16.mxu1 %v2698_v6 }
 0x43f   :  { %2381 = vmatpush3.bf16.msra.mxu1 %v2505_v25  ;;  %v2539_v25 = vld [vmem:[#allocation5 + $0xf0] ss:$12 sps:$4 sm:$0xff]  }
 0x440   :  { %2382 = vmatprep.subr.bf16.mxu1 %v2698_v6 }
 0x443   :  { %2383 = vmatpush3.bf16.msra.mxu1 %v2506_v31 }
 0x444   :  { %2384 = vmatprep.subr.bf16.mxu1 %v2698_v6 }
 0x447   :  { %2385 = vmatpush3.bf16.msra.mxu1 %v2507_v32  ;;  %v2545_v32 = vld [vmem:[#allocation5 + $0xc0] ss:$12 sps:$4 sm:$0xff]  }
 0x448   :  { %2397 = vmatprep.subr.bf16.mxu1 %v2698_v6 }
 0x4ea   :  { %v759_v2 = vpop.f32.mrf.mxu1 }
 0x4eb   :  { %v760_v9 = vadd.f32 %v2048_v5, %v759_v2  ;;  %v2591_v2 = vld [vmem:[#allocation5 + $0x1d0] ss:$12 sps:$4 sm:$0xff]  }
 0x4ec   :  { %v2334_v7 = vpop.f32.mrf.mxu1 }
 0x4ed   :  { %v766_v13 = vmax.f32 %v760_v9, 0.0  ;;  %v2599_v7 = vld [vmem:[#allocation5 + $0x1a0] ss:$12 sps:$4 sm:$0xff]  }
 0x4ee   :  { %v762_v8 = vpop.f32.mrf.mxu1  ;;  %v2071_v9 = vld [vmem:[%s2955_s6 + $0x4] ss:$0 sm:$0xff] }
 0x4ef   :  { %v763_v10 = vadd.f32 %v2048_v5, %v762_v8  ;;  %v2595_v5 = vld [vmem:[#allocation5 + $0x1b8] ss:$12 sps:$4 sm:$0xff]  }
 0x4f0   :  { %v2335_v11 = vpop.f32.mrf.mxu1 }
 0x4f1   :  { %v767_v12 = vmax.f32 %v763_v10, 0.0 }
 0x4f3   :  { %2337 = vmatpush3.msra.mxu0 %v767_v12 }
 0x4f4   :  { %2338 = vmatprep.subr.mxu0 %v2698_v6 }
 0x4f5   :  { %2339 = vmatpush3.msra.mxu0 %v766_v13 }
 0x4f6   :  { %2341 = vmatmul.mubr.msk.f32.vlgmr.msra.gmra.mxu0 %vm97_vm0, %v2824_v34  ;;  %2343 = vmatprep.subr.mxu0 %v767_v12 }
 0x4f7   :  { %2344 = vmatpush3.msra.mxu0 %v767_v12  ;;  %2347 = vmatprep.mubr.msk.f32.mxu0 %vm97_vm0, %v2785_v3  ;;  %v2495_v3 = vld [vmem:[#allocation3 + $0xe0] sm:$0xff]  }
 0x4f8   :  { %2345 = vmatprep.subr.mxu0 %v766_v13 }
 0x4f9   :  { %2346 = vmatpush3.msra.mxu0 %v766_v13 }
 0x4fa   :  { %2348 = vmatmul.mubr.msk.f32.vlgmr.msra.gmra.mxu0 %vm97_vm0, %v2792_v4  ;;  %2350 = vmatprep.subr.bf16.mxu0 %v2698_v6  ;;  %v2497_v4 = vld [vmem:[#allocation3 + $0xd0] sm:$0xff]  }
 0x4fb   :  { %2351 = vmatpush3.bf16.msra.mxu0 %v2492_v14  ;;  %2366 = vmatprep.mubr.msk.bf16.mxu0 %vm2699_vm2, %v2698_v6 }
 0x4fc   :  { %2352 = vmatprep.subr.bf16.mxu0 %v2698_v6 }
 0x4ff   :  { %2353 = vmatpush3.bf16.msra.mxu0 %v2493_v15 }
 0x500   :  { %2354 = vmatprep.subr.bf16.mxu0 %v2698_v6 }
 0x503   :  { %2355 = vmatpush3.bf16.msra.mxu0 %v2494_v16  ;;  %v2526_v16 = vld [vmem:[#allocation5 + $0x16c] ss:$12 sps:$4 sm:$0xff]  }
 0x504   :  { %2356 = vmatprep.subr.bf16.mxu0 %v2698_v6 }
 0x507   :  { %2357 = vmatpush3.bf16.msra.mxu0 %v2495_v3 }
 0x508   :  { %2358 = vmatprep.subr.bf16.mxu0 %v2698_v6 }
 0x50b   :  { %2359 = vmatpush3.bf16.msra.mxu0 %v2496_v17  ;;  %v2524_v17 = vld [vmem:[#allocation5 + $0x168] ss:$12 sps:$4 sm:$0xff]  }
 0x50c   :  { %2360 = vmatprep.subr.bf16.mxu0 %v2698_v6 }
 0x50f   :  { %2361 = vmatpush3.bf16.msra.mxu0 %v2497_v4  ;;  %v2529_v4 = vld [vmem:[#allocation5 + $0x154] ss:$12 sps:$4 sm:$0xff]  }
 0x510   :  { %2362 = vmatprep.subr.bf16.mxu0 %v2698_v6 }
 0x513   :  { %2363 = vmatpush3.bf16.msra.mxu0 %v2498_v18  ;;  %v2527_v18 = vld [vmem:[#allocation5 + $0x150] ss:$12 sps:$4 sm:$0xff]  }
 0x514   :  { %2364 = vmatprep.subr.bf16.mxu0 %v2698_v6 }
 0x517   :  { %2365 = vmatpush3.bf16.msra.mxu0 %v2499_v19  ;;  %v2700_v19 = vmov 0  }
 0x518   :  { %2390 = vmatprep.subr.mxu0 %v2698_v6 }
 0x5b6   :  { %v834_v26 = vpop.f32.mrf.mxu0 }
 0x5b7   :  { %v2904_v54 = vpack.c.bf16 %v834_v26, %v834_v26  ;;  %v2544_v26 = vld [vmem:[#allocation5 + $0xdc] ss:$12 sps:$4 sm:$0xff]  }
 0x5b8   :  { %v2342_v27 = vpop.f32.mrf.mxu0 }
 0x5ba   :  { %v2349_v28 = vpop.f32.mrf.mxu0 }
 0x5bc   :  { %v904_v29 = vpop.f32.mrf.mxu0 }
 0x5bd   :  { %v951_v30 = vpack.c.bf16 %v2349_v28, %v904_v29  ;;  %v2542_v28 = vld [vmem:[#allocation5 + $0xd8] ss:$12 sps:$4 sm:$0xff]  }
 0x5bf   :  { %2367 = vmatmul.mubr.bf16.vlgmr.msra.gmra.mxu0 %v951_v30  ;;  %v2547_v30 = vld [vmem:[#allocation5 + $0xc4] ss:$12 sps:$4 sm:$0xff]  }
 0x5c0   :  { %2394 = vmatprep.mubr.msk.f32.mxu0 %vm2699_vm2, %v2698_v6 }
 0x67f   :  { %v1040_v35 = vpop.f32.mrf.mxu0 }
 0x680   :  { %v1041_v37 = vadd.f32 %v2062_v33, %v1040_v35  ;;  %v2550_v35 = vld [vmem:[#allocation5 + $0xac] ss:$12 sps:$4 sm:$0xff]  }
 0x681   :  { %v2368_v36 = vpop.f32.mrf.mxu0 }
 0x682   :  { %v1047_v41 = vmax.f32 %v1041_v37, 0.0  ;;  %v2548_v36 = vld [vmem:[#allocation5 + $0xa8] ss:$12 sps:$4 sm:$0xff]  }
 0x683   :  { %v1043_v38 = vpop.f32.mrf.mxu0  ;;  %v2553_v37 = vld [vmem:[#allocation5 + $0x94] ss:$12 sps:$4 sm:$0xff]  }
 0x684   :  { %v1044_v39 = vadd.f32 %v2062_v33, %v1043_v38  ;;  %v2551_v38 = vld [vmem:[#allocation5 + $0x90] ss:$12 sps:$4 sm:$0xff]  }
 0x685   :  { %v2369_v40 = vpop.f32.mrf.mxu0 }
 0x686   :  { %v1048_v42 = vmax.f32 %v1044_v39, 0.0  ;;  %v2556_v39 = vld [vmem:[#allocation5 + $0x7c] ss:$12 sps:$4 sm:$0xff]   ;;  %v2554_v40 = vld [vmem:[#allocation5 + $0x78] ss:$12 sps:$4 sm:$0xff]  }
 0x688   :  { %v1049_v44 = vpack.c.bf16 %v1048_v42, %v1047_v41  ;;  %v2559_v41 = vld [vmem:[#allocation5 + $0x64] ss:$12 sps:$4 sm:$0xff]   ;;  %v2557_v42 = vld [vmem:[#allocation5 + $0x60] ss:$12 sps:$4 sm:$0xff]  }
 0x68a   :  { %2387 = vmatmul.mubr.bf16.vlgmr.msra.gmra.mxu1 %v1049_v44  ;;  %v2560_v44 = vld [vmem:[#allocation5 + $0x48] ss:$12 sps:$4 sm:$0xff]  }
 0x68b   :  { %2398 = vmatpush3.bf16.msra.mxu1 %v2508_v43  ;;  %2413 = vmatprep.mubr.msk.bf16.mxu1 %vm2699_vm2, %v2698_v6  ;;  %v2562_v43 = vld [vmem:[#allocation5 + $0x4c] ss:$12 sps:$4 sm:$0xff]  }
 0x68c   :  { %2399 = vmatprep.subr.bf16.mxu1 %v2698_v6 }
 0x68f   :  { %2400 = vmatpush3.bf16.msra.mxu1 %v2509_v45  ;;  %v2565_v45 = vld [vmem:[#allocation5 + $0x34] ss:$12 sps:$4 sm:$0xff]  }
 0x690   :  { %2401 = vmatprep.subr.bf16.mxu1 %v2698_v6 }
 0x693   :  { %2402 = vmatpush3.bf16.msra.mxu1 %v2510_v46  ;;  %v2563_v46 = vld [vmem:[#allocation5 + $0x30] ss:$12 sps:$4 sm:$0xff]  }
 0x694   :  { %2403 = vmatprep.subr.bf16.mxu1 %v2698_v6 }
 0x697   :  { %2404 = vmatpush3.bf16.msra.mxu1 %v2511_v47  ;;  %v2568_v47 = vld [vmem:[#allocation5 + $0x1c] ss:$12 sps:$4 sm:$0xff]  }
 0x698   :  { %2405 = vmatprep.subr.bf16.mxu1 %v2698_v6 }
 0x69b   :  { %2406 = vmatpush3.bf16.msra.mxu1 %v2512_v49 }
 0x69c   :  { %2407 = vmatprep.subr.bf16.mxu1 %v2698_v6 }
 0x69f   :  { %2408 = vmatpush3.bf16.msra.mxu1 %v2513_v50 }
 0x6a0   :  { %2409 = vmatprep.subr.bf16.mxu1 %v2698_v6 }
 0x6a3   :  { %2410 = vmatpush3.bf16.msra.mxu1 %v2514_v51  ;;  %v2566_v51 = vld [vmem:[#allocation5 + $0x18] ss:$12 sps:$4 sm:$0xff]  }
 0x6a4   :  { %2411 = vmatprep.subr.bf16.mxu1 %v2698_v6 }
 0x6a7   :  { %2412 = vmatpush3.bf16.msra.mxu1 %v2515_v52 }
 0x6a8   :  { %2417 = vmatprep.subr.bf16.mxu1 %v2698_v6 }
 0x6aa   :  { %2414 = vmatmul.mubr.bf16.vlgmr.msra.gmra.mxu1 %v2904_v54 }
 0x6ab   :  { %2418 = vmatpush3.bf16.msra.mxu1 %v2516_v53  ;;  %2433 = vmatprep.mubr.msk.bf16.mxu1 %vm2699_vm2, %v2698_v6  ;;  %v2571_v53 = vld [vmem:[#allocation5 + $0x4] ss:$12 sps:$4 sm:$0xff]  }
 0x6ac   :  { %2419 = vmatprep.subr.bf16.mxu1 %v2698_v6 }
 0x6af   :  { %2420 = vmatpush3.bf16.msra.mxu1 %v2517_v55  ;;  %v2569_v55 = vld [vmem:[#allocation5] ss:$12 sps:$4 sm:$0xff]  }
 0x6b0   :  { %2421 = vmatprep.subr.bf16.mxu1 %v2698_v6 }
 0x6b3   :  { %2422 = vmatpush3.bf16.msra.mxu1 %v2518_v56 }
 0x6b4   :  { %2423 = vmatprep.subr.bf16.mxu1 %v2698_v6 }
 0x6b7   :  { %2424 = vmatpush3.bf16.msra.mxu1 %v2519_v57  ;;  %v2574_v57 = vld [vmem:[#allocation5 + $0x22c] ss:$12 sps:$4 sm:$0xff]  }
 0x6b8   :  { %2425 = vmatprep.subr.bf16.mxu1 %v2698_v6 }
 0x6bb   :  { %2426 = vmatpush3.bf16.msra.mxu1 %v2520_v58  ;;  %v2572_v58 = vld [vmem:[#allocation5 + $0x228] ss:$12 sps:$4 sm:$0xff]  }
 0x6bc   :  { %2427 = vmatprep.subr.bf16.mxu1 %v2698_v6 }
 0x6bf   :  { %2428 = vmatpush3.bf16.msra.mxu1 %v2521_v59  ;;  %v2578_v59 = vld [vmem:[#allocation5 + $0x214] ss:$12 sps:$4 sm:$0xff]  }
 0x6c0   :  { %2429 = vmatprep.subr.bf16.mxu1 %v2698_v6 }
 0x6c3   :  { %2430 = vmatpush3.bf16.msra.mxu1 %v2522_v60  ;;  %v2603_v60 = vld [vmem:[#allocation5 + $0x188] ss:$12 sps:$4 sm:$0xff]  }
 0x6c4   :  { %2431 = vmatprep.subr.bf16.mxu1 %v2698_v6 }
 0x6c7   :  { %2432 = vmatpush3.bf16.msra.mxu1 %v2523_v61  ;;  %v2576_v61 = vld [vmem:[#allocation5 + $0x210] ss:$12 sps:$4 sm:$0xff]  }
 0x6c8   :  { %2437 = vmatprep.subr.bf16.mxu1 %v2698_v6 }
 0x6ca   :  { %2434 = vmatmul.mubr.bf16.vlgmr.msra.gmra.mxu1 %v2919_v62 }
 0x6cb   :  { %2453 = vmatprep.mubr.msk.bf16.mxu1 %vm2699_vm2, %v2698_v6  ;;  %2438 = vmatpush3.bf16.msra.mxu1 %v2575_v63  ;;  %v2582_v63 = vld [vmem:[#allocation5 + $0x1fc] ss:$12 sps:$4 sm:$0xff]  }
 0x6cc   :  { %2439 = vmatprep.subr.bf16.mxu1 %v2698_v6 }
 0x6cf   :  { %2440 = vmatpush3.bf16.msra.mxu1 %v2579_v0  ;;  %v2580_v0 = vld [vmem:[#allocation5 + $0x1f8] ss:$12 sps:$4 sm:$0xff]  }
 0x6d0   :  { %2441 = vmatprep.subr.bf16.mxu1 %v2698_v6 }
 0x6d3   :  { %2442 = vmatpush3.bf16.msra.mxu1 %v2583_v1  ;;  %v2586_v1 = vld [vmem:[#allocation5 + $0x1e4] ss:$12 sps:$4 sm:$0xff]  }
 0x6d4   :  { %2443 = vmatprep.subr.bf16.mxu1 %v2698_v6 }
 0x6d7   :  { %2444 = vmatpush3.bf16.msra.mxu1 %v2587_v48  ;;  %v2584_v48 = vld [vmem:[#allocation5 + $0x1e0] ss:$12 sps:$4 sm:$0xff]  }
 0x6d8   :  { %2445 = vmatprep.subr.bf16.mxu1 %v2698_v6 }
 0x6db   :  { %2446 = vmatpush3.bf16.msra.mxu1 %v2591_v2  ;;  %v2590_v2 = vld [vmem:[#allocation5 + $0x1cc] ss:$12 sps:$4 sm:$0xff]  }
 0x6dc   :  { %2447 = vmatprep.subr.bf16.mxu1 %v2698_v6 }
 0x6df   :  { %2448 = vmatpush3.bf16.msra.mxu1 %v2595_v5  ;;  %v2588_v5 = vld [vmem:[#allocation5 + $0x1c8] ss:$12 sps:$4 sm:$0xff]  }
 0x6e0   :  { %2449 = vmatprep.subr.bf16.mxu1 %v2698_v6 }
 0x6e3   :  { %2450 = vmatpush3.bf16.msra.mxu1 %v2599_v7  ;;  %v2594_v7 = vld [vmem:[#allocation5 + $0x1b4] ss:$12 sps:$4 sm:$0xff]  }
 0x6e4   :  { %2451 = vmatprep.subr.bf16.mxu1 %v2698_v6 }
 0x6e7   :  { %2452 = vmatpush3.bf16.msra.mxu1 %v2603_v60 }
 0x74a   :  { %v1138_v8 = vpop.f32.mrf.mxu1 }
 0x74b   :  { %v1139_v12 = vadd.f32 %v2071_v9, %v1138_v8  ;;  %v2598_v8 = vld [vmem:[#allocation5 + $0x19c] ss:$12 sps:$4 sm:$0xff]  }
 0x74c   :  { %v2388_v10 = vpop.f32.mrf.mxu1 }
 0x74d   :  { %v1145_v3 = vmax.f32 %v1139_v12, 0.0  ;;  %v2602_v10 = vld [vmem:[#allocation5 + $0x184] ss:$12 sps:$4 sm:$0xff]  }
 0x74e   :  { %v1141_v11 = vpop.f32.mrf.mxu1 }
 0x74f   :  { %v1142_v13 = vadd.f32 %v2071_v9, %v1141_v11  ;;  %v2596_v9 = vld [vmem:[#allocation5 + $0x198] ss:$12 sps:$4 sm:$0xff]   ;;  %v2600_v11 = vld [vmem:[#allocation5 + $0x180] ss:$12 sps:$4 sm:$0xff]  }
 0x750   :  { %v2389_v14 = vpop.f32.mrf.mxu1 }
 0x751   :  { %v1146_v15 = vmax.f32 %v1142_v13, 0.0 }
 0x753   :  { %2391 = vmatpush3.msra.mxu0 %v1146_v15 }
 0x754   :  { %2392 = vmatprep.subr.mxu0 %v2698_v6  ;;  %v2538_v6 = vld [vmem:[#allocation5 + $0x10c] ss:$12 sps:$4 sm:$0xff]  }
 0x755   :  { %2393 = vmatpush3.msra.mxu0 %v1145_v3 }
 0x756   :  { %2395 = vmatmul.mubr.msk.f32.vlgmr.msra.gmra.mxu0 %vm97_vm0, %v2824_v34  ;;  %1411 = vmatprep.subr.bf16.mxu0 %v2526_v16  ;;  %v2541_v34 = vld [vmem:[#allocation5 + $0xf4] ss:$12 sps:$4 sm:$0xff]  }
 0x757   :  { %1412 = vmatpush1.bf16.msra.mxu0 %v2524_v17  ;;  %1443 = vmatprep.mubr.bf16.mxu0 %v2700_v19 }
 0x758   :  { %1413 = vmatprep.subr.bf16.mxu0 %v2529_v4 }
 0x75b   :  { %1414 = vmatpush1.bf16.msra.mxu0 %v2527_v18 }
 0x75c   :  { %1415 = vmatprep.subr.bf16.mxu0 %v2532_v20 }
 0x75f   :  { %1416 = vmatpush1.bf16.msra.mxu0 %v2530_v21 }
 0x760   :  { %1417 = vmatprep.subr.bf16.mxu0 %v2535_v22 }
 0x763   :  { %1418 = vmatpush1.bf16.msra.mxu0 %v2533_v23  ;;  %v1948_v23 = vlaneseq }
 0x764   :  { %1419 = vmatprep.subr.bf16.mxu0 %v2538_v6 }
 0x765   :  { %v1949_v6 = vshrl.u32 %v1948_v23, 7 }
 0x767   :  { %1420 = vmatpush1.bf16.msra.mxu0 %v2536_v24  ;;  %v1950_v24 = vsub.s32 0, %v1949_v6 }
 0x768   :  { %1421 = vmatprep.subr.bf16.mxu0 %v2541_v34  ;;  %v1958_v34 = vsub.s32 2, %v1949_v6 }
 0x76a   :  { %v1486_v27 = vpop.f32.mrf.mxu1 }
 0x76b   :  { %1422 = vmatpush1.bf16.msra.mxu0 %v2539_v25  ;;  %v1946_v25 = vld [vmem:[#allocation7] sm:$0x7] }
 0x76c   :  { %v2415_v29 = vpop.f32.mrf.mxu1  ;;  %1423 = vmatprep.subr.bf16.mxu0 %v2544_v26  ;;  %v1954_v26 = vsub.s32 1, %v1949_v6 }
 0x76e   :  { %v1489_v31 = vpop.f32.mrf.mxu1 }
 0x76f   :  { %1424 = vmatpush1.bf16.msra.mxu0 %v2542_v28  ;;  %v1959_v28 = vrot.slane %v1946_v25, %v1958_v34 }
 0x770   :  { %v2416_v33 = vpop.f32.mrf.mxu1  ;;  %1425 = vmatprep.subr.bf16.mxu0 %v2547_v30 }
 0x771   :  { %v1955_v33 = vrot.slane %v1946_v25, %v1954_v26 }
 0x773   :  { %1426 = vmatpush1.bf16.msra.mxu0 %v2545_v32 }
 0x774   :  { %1620 = vmatprep.subr.bf16.mxu0 %v2550_v35  ;;  %v1975_v35 = vld [vmem:[#allocation8] sm:$0x7] }
 0x776   :  { %1444 = vmatmul.mubr.bf16.vlgmr.msra.gmra.mxu0 %v2904_v54 }
 0x777   :  { %1621 = vmatpush1.bf16.msra.mxu0 %v2548_v36  ;;  %1652 = vmatprep.mubr.bf16.mxu0 %v2700_v19 }
 0x778   :  { %1622 = vmatprep.subr.bf16.mxu0 %v2553_v37 }
 0x77b   :  { %1623 = vmatpush1.bf16.msra.mxu0 %v2551_v38 }
 0x77c   :  { %1624 = vmatprep.subr.bf16.mxu0 %v2556_v39 }
 0x77f   :  { %1625 = vmatpush1.bf16.msra.mxu0 %v2554_v40 }
 0x780   :  { %1626 = vmatprep.subr.bf16.mxu0 %v2559_v41 }
 0x783   :  { %1627 = vmatpush1.bf16.msra.mxu0 %v2557_v42 }
 0x784   :  { %1628 = vmatprep.subr.bf16.mxu0 %v2562_v43  ;;  %v1980_v43 = vrot.slane %v1975_v35, %v1950_v24 }
 0x787   :  { %1629 = vmatpush1.bf16.msra.mxu0 %v2560_v44 }
 0x788   :  { %1630 = vmatprep.subr.bf16.mxu0 %v2565_v45 }
 0x78a   :  { %v1695_v49 = vpop.f32.mrf.mxu1 }
 0x78b   :  { %v2941_v50 = vadd.f32 %v1695_v49, %v1486_v27  ;;  %1631 = vmatpush1.bf16.msra.mxu0 %v2563_v46  ;;  %v1951_v27 = vrot.slane %v1946_v25, %v1950_v24 }
 0x78c   :  { %v2435_v52 = vpop.f32.mrf.mxu1  ;;  %1632 = vmatprep.subr.bf16.mxu0 %v2568_v47 }
 0x78d   :  { %v1988_v52 = vrot.slane %v1975_v35, %v1958_v34 }
 0x78e   :  { %v1698_v54 = vpop.f32.mrf.mxu1 }
 0x78f   :  { %1633 = vmatpush1.bf16.msra.mxu0 %v2566_v51  ;;  %v1984_v51 = vrot.slane %v1975_v35, %v1954_v26 }
 0x790   :  { %v2436_v56 = vpop.f32.mrf.mxu1  ;;  %1634 = vmatprep.subr.bf16.mxu0 %v2571_v53 }
 0x793   :  { %1635 = vmatpush1.bf16.msra.mxu0 %v2569_v55 }
 0x794   :  { %1862 = vmatprep.subr.bf16.mxu0 %v2574_v57 }
 0x796   :  { %1653 = vmatmul.mubr.bf16.vlgmr.msra.gmra.mxu0 %v2919_v62  ;;  %v2592_v62 = vld [vmem:[#allocation5 + $0x1b0] ss:$12 sps:$4 sm:$0xff]  }
 0x797   :  { %1863 = vmatpush1.bf16.msra.mxu0 %v2572_v58  ;;  %1894 = vmatprep.mubr.bf16.mxu0 %v2700_v19 }
 0x798   :  { %1864 = vmatprep.subr.bf16.mxu0 %v2578_v59 }
 0x79b   :  { %1865 = vmatpush1.bf16.msra.mxu0 %v2576_v61 }
 0x79c   :  { %1866 = vmatprep.subr.bf16.mxu0 %v2582_v63 }
 0x79f   :  { %1867 = vmatpush1.bf16.msra.mxu0 %v2580_v0 }
 0x7a0   :  { %1868 = vmatprep.subr.bf16.mxu0 %v2586_v1  ;;  %v2153_v1 = vld [vmem:[#allocation2] ss:$0 sm:$0xff] }
 0x7a3   :  { %1869 = vmatpush1.bf16.msra.mxu0 %v2584_v48 }
 0x7a4   :  { %1870 = vmatprep.subr.bf16.mxu0 %v2590_v2 }
 0x7a7   :  { %1871 = vmatpush1.bf16.msra.mxu0 %v2588_v5 }
 0x7a8   :  { %1872 = vmatprep.subr.bf16.mxu0 %v2594_v7 }
 0x7ab   :  { %1873 = vmatpush1.bf16.msra.mxu0 %v2592_v62 }
 0x7ac   :  { %1874 = vmatprep.subr.bf16.mxu0 %v2598_v8 }
 0x7af   :  { %1875 = vmatpush1.bf16.msra.mxu0 %v2596_v9 }
 0x7b0   :  { %1876 = vmatprep.subr.bf16.mxu0 %v2602_v10 }
 0x7b3   :  { %1877 = vmatpush1.bf16.msra.mxu0 %v2600_v11 }
 0x816   :  { %v1213_v12 = vpop.f32.mrf.mxu0 }
 0x817   :  { %v1701_v13 = vpack.c.bf16 %v1213_v12, %v1213_v12 }
 0x818   :  { %v2396_v14 = vpop.f32.mrf.mxu0 }
 0x819   :  { %1895 = vmatmul.mubr.bf16.vlgmr.msra.gmra.mxu0 %v1701_v13  ;;  %2454 = vmatmul.mubr.bf16.vlgmr.msra.gmra.mxu1 %v1701_v13 }
 0x836   :  { %v1445_v15 = vpop.f32.mrf.mxu0 }
 0x838   :  { %v1447_v16 = vpop.f32.mrf.mxu0 }
 0x83a   :  { %v1449_v3 = vpop.f32.mrf.mxu0 }
 0x83c   :  { %v1450_v17 = vpop.f32.mrf.mxu0 }
 0x856   :  { %v1654_v4 = vpop.f32.mrf.mxu0 }
 0x857   :  { %v1655_v18 = vadd.f32 %v1654_v4, %v1445_v15 }
 0x858   :  { %v1656_v19 = vpop.f32.mrf.mxu0 }
 0x859   :  { %v1657_v20 = vadd.f32 %v1656_v19, %v1447_v16 }
 0x85a   :  { %v1658_v21 = vpop.f32.mrf.mxu0 }
 0x85c   :  { %v1659_v22 = vpop.f32.mrf.mxu0 }
 0x8d9   :  { %v1896_v29 = vpop.f32.mrf.mxu0  ;;  %v1937_v30 = vpop.f32.mrf.mxu1 }
 0x8da   :  { %v1943_v31 = vadd.f32 %v1896_v29, %v1655_v18  ;;  %v1945_v32 = vadd.f32 %v1937_v30, %v2941_v50 }
 0x8db   :  { %v1898_v36 = vpop.f32.mrf.mxu0  ;;  %v2455_v37 = vpop.f32.mrf.mxu1 }
 0x8dc   :  { %v1963_v38 = vadd.f32 %v1951_v27, %v1943_v31  ;;  %v1965_v39 = vadd.f32 %v1959_v28, %v1945_v32  ;;  %v1944_v40 = vadd.f32 %v1898_v36, %v1657_v20 }
 0x8dd   :  { %v1900_v41 = vpop.f32.mrf.mxu0  ;;  %v1940_v42 = vpop.f32.mrf.mxu1 }
 0x8de   :  { %vm1966_vm3 = vcmp.gt.f32.partialorder %v1963_v38, 0.0  ;;  %v1969_v44 = vmul.f32 0.01, %v1963_v38  ;;  %v1971_v45 = vmul.f32 0.01, %v1965_v39  ;;  %v1964_v46 = vadd.f32 %v1955_v33, %v1944_v40 }
 0x8df   :  { %v1901_v47 = vpop.f32.mrf.mxu0  ;;  %v2456_v49 = vpop.f32.mrf.mxu1  ;;  %vm1968_vm4 = vcmp.gt.f32.partialorder %v1965_v39, 0.0 }
 0x8e0   :  { %vm1967_vm5 = vcmp.gt.f32.partialorder %v1964_v46, 0.0  ;;  %v1970_v50 = vmul.f32 0.01, %v1964_v46  ;;  %v1972_v53 = vsel %vm1966_vm3, %v1963_v38, %v1969_v44  ;;  %v1974_v54 = vsel %vm1968_vm4, %v1965_v39, %v1971_v45 }
 0x8e1   :  { %v1992_v55 = vmul.f32 %v1980_v43, %v1972_v53  ;;  %v1994_v58 = vmul.f32 %v1988_v52, %v1974_v54 }
 0x8e2   :  { %v1973_v56 = vsel %vm1967_vm5, %v1964_v46, %v1970_v50 }
 0x8e3   :  { %v1993_v57 = vmul.f32 %v1984_v51, %v1973_v56  ;;  %v1996_v59 = vsel %vm1995_vm6, %v1992_v55, 0.0  ;;  %v1999_v63 = vsel %vm1995_vm6, %v1994_v58, 0.0 }
 0x8e5   :  { %v1997_v60 = vsel %vm1995_vm6, %v1993_v57, 0.0 }
 0x8e6   :  { %v1998_v61 = vadd.f32 %v1997_v60, %v1996_v59 }
 0x8e8   :  { %v2000_v0 = vadd.f32 %v1999_v63, %v1998_v61 }
 0x8ea   :  { %2001 = vadd.xlane.f32.xlu0 %v2000_v0 }
 0x973   :  { %v2002_v48 = vpop.xlane.xlu0 %2001 }
 0x974   :  { %v2010_v2 = vadd.f32 %v2153_v1, %v2002_v48 }
 0x976   :  { %2012 = vst.msk [vmem:[%s2960_s11] sm:$0x3] %vm2011_vm7, %v2010_v2 }
 0x977   :  { %2017 = vsyncpa [#allocation4], 1 }
 0x978   :  { %2018 = vsyncpa [#allocation6], 1 }
 0x979   :  { %2019 = vsyncpa [#allocation9], 1 }

</bundles_post_ra>
